<compile_context>
chip_gen: v7x
topology: tpu7x:2x2x1
jax: 0.10.0
libtpu: 0.0.40
codegen_flags: <defaults>
</compile_context>

<pallas_src>
import functools

import jax
import jax.numpy as jnp
from jax.experimental import pallas as pl
from jax.experimental.pallas import tpu as pltpu


def _round_up(x, m):
    return (x + m - 1) // m * m


def _mlp_kernel(*refs, num_layers):
    """refs = (x_ref, w0, b0, w1, b1, ..., o_ref).

    x_ref : (tm, d_in) row tile (input dtype, e.g. f32).
    w_i   : (d_i, d_{i+1}) pre-transposed weight, full grid-invariant block (bf16).
    b_i   : (1, d_{i+1}) bias.
    o_ref : (tm, d_out_padded) lane-dense output row tile.
    """
    x_ref = refs[0]
    o_ref = refs[-1]
    wb = refs[1:-1]

    h = x_ref[...]                                        # (tm, d_in)
    for i in range(num_layers):
        w = wb[2 * i][...]                                # (d_i, d_{i+1})
        b = wb[2 * i + 1][...].astype(jnp.float32)        # (1, d_{i+1})
        # bf16 x bf16 MXU matmul, f32 accumulation; bias-add / ReLU kept in f32.
        h = jnp.dot(h.astype(w.dtype), w, preferred_element_type=jnp.float32) + b
        if i < num_layers - 1:
            h = jnp.maximum(h, 0.0)
        # TODO(synk): for hidden dims >> 512, chunk the weight columns (e.g. 256
        # lanes at a time) into a VMEM scratch accumulator to avoid vreg spills.
    o_ref[...] = h.astype(o_ref.dtype)


def _vmem_limit_bytes(tm, dims, x_itemsize, w_itemsize, single_buffer_weights):
    """Dtype-aware VMEM budget, capped to the actual chip's capacity."""
    wbuf = 1 if single_buffer_weights else 2
    weight_bytes = sum(dims[i] * dims[i + 1] + dims[i + 1]
                       for i in range(len(dims) - 1)) * w_itemsize * wbuf
    io_bytes = 2 * tm * (dims[0] + dims[-1]) * x_itemsize      # double-buffered row tiles
    act_bytes = 2 * tm * max(dims) * 4                         # f32 intermediates
    total = weight_bytes + io_bytes + act_bytes
    try:
        # ~51 MiB on v7x (64 MiB physical/TC), ~102 MiB on v5e/v6e (128 MiB).
        cap = int(pltpu.get_tpu_info().vmem_capacity_bytes * 0.8)
    except Exception:
        cap = 50 * 1024 * 1024                                 # safe for v7x's 64 MiB
    return int(min(max(2 * total, 32 * 1024 * 1024), cap))


def mlp_pallas(x, weights, biases, *, block_rows=256, single_buffer_weights=True):
    """Apply the MLP to x of shape (..., d_in).

    weights[i] : (d_i, d_{i+1})  -- pre-transposed (x @ w layout), bf16 preferred.
    biases[i]  : (1, d_{i+1}).
    """
    num_layers = len(weights)
    assert len(biases) == num_layers
    d_in = x.shape[-1]
    d_out = weights[-1].shape[1]
    lead = x.shape[:-1]

    weights = list(weights)
    biases = list(biases)

    # Lane-dense output: pad the last layer's columns to a multiple of 128 so the
    # HBM writeback uses full, unmasked vector stores; slice back at the end.
    d_out_p = _round_up(d_out, 128)
    if d_out_p != d_out:
        weights[-1] = jnp.pad(weights[-1], ((0, 0), (0, d_out_p - d_out)))
        biases[-1] = jnp.pad(biases[-1], ((0, 0), (0, d_out_p - d_out)))

    m = 1
    for s in lead:
        m *= s
    x2 = x.reshape(m, d_in)

    # Row tiling: near-equal tiles (multiple of 8 sublanes), and >=2 grid steps
    # when m allows so the "parallel" row axis shards across v7x's two TCs.
    n_tiles = pl.cdiv(m, block_rows)
    if m >= 16:
        n_tiles = max(n_tiles, 2)
    tm = _round_up(pl.cdiv(m, n_tiles), 8)
    mp = _round_up(m, tm)
    if mp != m:
        x2 = jnp.pad(x2, ((0, mp - m), (0, 0)))
    grid = (mp // tm,)

    dims = [d_in] + [w.shape[1] for w in weights]
    x_itemsize = jnp.dtype(x.dtype).itemsize
    w_itemsize = jnp.dtype(weights[0].dtype).itemsize

    operands = [x2]
    for w, b in zip(weights, biases):
        operands.append(w)
        operands.append(b)

    def build_call(single_buffer):
        def wb_spec(arr):
            idx = lambda i: (0,) * arr.ndim
            if single_buffer:
                # Grid-invariant weights/biases: fetched once, one VMEM copy.
                return pl.BlockSpec(arr.shape, idx, pipeline_mode=pl.Buffered(1))
            return pl.BlockSpec(arr.shape, idx)

        in_specs = [pl.BlockSpec((tm, d_in), lambda i: (i, 0))]
        for w, b in zip(weights, biases):
            in_specs.append(wb_spec(w))
            in_specs.append(wb_spec(b))

        return pl.pallas_call(
            functools.partial(_mlp_kernel, num_layers=num_layers),
            out_shape=jax.ShapeDtypeStruct((mp, d_out_p), x.dtype),
            grid=grid,
            in_specs=in_specs,
            out_specs=pl.BlockSpec((tm, d_out_p), lambda i: (i, 0)),
            compiler_params=pltpu.CompilerParams(
                dimension_semantics=("parallel",),
                vmem_limit_bytes=_vmem_limit_bytes(
                    tm, dims, x_itemsize, w_itemsize, single_buffer),
            ),
        )

    if single_buffer_weights:
        try:
            out = build_call(True)(*operands)
        except Exception:
            # Fallback for JAX versions without pipeline_mode=pl.Buffered(1).
            out = build_call(False)(*operands)
    else:
        out = build_call(False)(*operands)

    return out[:m, :d_out].reshape(*lead, d_out)


def init_mlp_params(key, input_dim, hidden_dim, output_dim, num_layers,
                    dtype=jnp.bfloat16):
    """Weights stored pre-transposed as (n_in, n_out); biases as (1, n_out)."""
    h = [hidden_dim] * (num_layers - 1)
    in_dims = [input_dim] + h
    out_dims = h + [output_dim]
    keys = jax.random.split(key, 2 * num_layers)
    weights, biases = [], []
    for i, (n_in, n_out) in enumerate(zip(in_dims, out_dims)):
        w = (jax.random.normal(keys[2 * i], (n_in, n_out), jnp.float32) * 0.05
             ).astype(dtype)
        b = (jax.random.normal(keys[2 * i + 1], (1, n_out), jnp.float32) * 0.05
             ).astype(dtype)
        weights.append(w)
        biases.append(b)
    return weights, biases


def mlp_reference(x, weights, biases):
    """Pure-JAX reference with the same mixed-precision recipe as the kernel."""
    n = len(weights)
    h = x
    for i, (w, b) in enumerate(zip(weights, biases)):
        h = (jnp.dot(h.astype(w.dtype), w, preferred_element_type=jnp.float32)
             + b[0].astype(jnp.float32))
        if i < n - 1:
            h = jnp.maximum(h, 0.0)
    return h.astype(x.dtype)


if __name__ == "__main__":
    # Small shapes consistent with DETR's MLP usage: x = (batch, queries, input_dim).
    BATCH, SEQ = 2, 8
    INPUT_DIM, HIDDEN_DIM, OUTPUT_DIM, NUM_LAYERS = 32, 64, 32, 3

    key = jax.random.PRNGKey(0)
    k_x, k_p = jax.random.split(key)
    x = jax.random.normal(k_x, (BATCH, SEQ, INPUT_DIM), jnp.float32)

    weights, biases = init_mlp_params(k_p, INPUT_DIM, HIDDEN_DIM, OUTPUT_DIM,
                                      NUM_LAYERS, dtype=jnp.bfloat16)

    out = mlp_pallas(x, weights, biases)
    jax.block_until_ready(out)
    assert out.shape == (BATCH, SEQ, OUTPUT_DIM)

    ref = mlp_reference(x, weights, biases)
    max_err = jnp.max(jnp.abs(out - ref))
    assert jnp.allclose(out, ref, rtol=2e-3, atol=2e-3), (
        f"mismatch vs reference (max abs err {max_err})")

    print("KERNEL_OK")
</pallas_src>

<mosaic_0001>
module attributes {stable_mosaic.version = 11 : i64} {
  func.func @_mlp_kernel(%arg0: i32, %arg1: memref<8x32xf32, #tpu.memory_space<vmem>>, %arg2: memref<32x64xbf16, #tpu.memory_space<vmem>>, %arg3: memref<1x64xbf16, #tpu.memory_space<vmem>>, %arg4: memref<64x64xbf16, #tpu.memory_space<vmem>>, %arg5: memref<1x64xbf16, #tpu.memory_space<vmem>>, %arg6: memref<64x128xbf16, #tpu.memory_space<vmem>>, %arg7: memref<1x128xbf16, #tpu.memory_space<vmem>>, %arg8: memref<8x128xf32, #tpu.memory_space<vmem>>) attributes {dimension_semantics = [#tpu.dimension_semantics<parallel>], iteration_bounds = array<i64: 2>, scalar_prefetch = 0 : i64, scratch_operands = 0 : i64, tpu.core_type = #tpu.core_type<tc>, window_params = [{transform_indices = @transform_0, window_bounds = array<i64: 8, 32>}, {pipeline_mode = #tpu.pipeline_mode<synchronous>, transform_indices = @transform_1, window_bounds = array<i64: 32, 64>}, {pipeline_mode = #tpu.pipeline_mode<synchronous>, transform_indices = @transform_2, window_bounds = array<i64: 1, 64>}, {pipeline_mode = #tpu.pipeline_mode<synchronous>, transform_indices = @transform_3, window_bounds = array<i64: 64, 64>}, {pipeline_mode = #tpu.pipeline_mode<synchronous>, transform_indices = @transform_4, window_bounds = array<i64: 1, 64>}, {pipeline_mode = #tpu.pipeline_mode<synchronous>, transform_indices = @transform_5, window_bounds = array<i64: 64, 128>}, {pipeline_mode = #tpu.pipeline_mode<synchronous>, transform_indices = @transform_6, window_bounds = array<i64: 1, 128>}, {transform_indices = @transform_7, window_bounds = array<i64: 8, 128>}]} {
    %c0 = arith.constant 0 : index
    %c0_0 = arith.constant 0 : index
    %0 = vector.load %arg1[%c0, %c0_0] : memref<8x32xf32, #tpu.memory_space<vmem>>, vector<8x32xf32>
    %c0_1 = arith.constant 0 : index
    %c0_2 = arith.constant 0 : index
    %1 = vector.load %arg2[%c0_1, %c0_2] : memref<32x64xbf16, #tpu.memory_space<vmem>>, vector<32x64xbf16>
    %c0_3 = arith.constant 0 : index
    %c0_4 = arith.constant 0 : index
    %2 = vector.load %arg3[%c0_3, %c0_4] : memref<1x64xbf16, #tpu.memory_space<vmem>>, vector<1x64xbf16>
    %3 = arith.extf %2 : vector<1x64xbf16> to vector<1x64xf32>
    %4 = arith.truncf %0 : vector<8x32xf32> to vector<8x32xbf16>
    %cst = arith.constant dense<0.000000e+00> : vector<8x64xf32>
    %5 = tpu.matmul %4, %1, %cst {dimension_numbers = #tpu.dot_dimension_numbers<[1], [0], [0], [1], [0, 0, 1, 1], [], []>} : vector<8x32xbf16>, vector<32x64xbf16>, vector<8x64xf32> -> vector<8x64xf32>
    %6 = vector.broadcast %3 : vector<1x64xf32> to vector<8x64xf32>
    %7 = arith.addf %5, %6 : vector<8x64xf32>
    %cst_5 = arith.constant 0.000000e+00 : f32
    %8 = vector.broadcast %cst_5 : f32 to vector<8x64xf32>
    %9 = arith.maximumf %7, %8 : vector<8x64xf32>
    %c0_6 = arith.constant 0 : index
    %c0_7 = arith.constant 0 : index
    %10 = vector.load %arg4[%c0_6, %c0_7] : memref<64x64xbf16, #tpu.memory_space<vmem>>, vector<64x64xbf16>
    %c0_8 = arith.constant 0 : index
    %c0_9 = arith.constant 0 : index
    %11 = vector.load %arg5[%c0_8, %c0_9] : memref<1x64xbf16, #tpu.memory_space<vmem>>, vector<1x64xbf16>
    %12 = arith.extf %11 : vector<1x64xbf16> to vector<1x64xf32>
    %13 = arith.truncf %9 : vector<8x64xf32> to vector<8x64xbf16>
    %cst_10 = arith.constant dense<0.000000e+00> : vector<8x64xf32>
    %14 = tpu.matmul %13, %10, %cst_10 {dimension_numbers = #tpu.dot_dimension_numbers<[1], [0], [0], [1], [0, 0, 1, 1], [], []>} : vector<8x64xbf16>, vector<64x64xbf16>, vector<8x64xf32> -> vector<8x64xf32>
    %15 = vector.broadcast %12 : vector<1x64xf32> to vector<8x64xf32>
    %16 = arith.addf %14, %15 : vector<8x64xf32>
    %cst_11 = arith.constant 0.000000e+00 : f32
    %17 = vector.broadcast %cst_11 : f32 to vector<8x64xf32>
    %18 = arith.maximumf %16, %17 : vector<8x64xf32>
    %c0_12 = arith.constant 0 : index
    %c0_13 = arith.constant 0 : index
    %19 = vector.load %arg6[%c0_12, %c0_13] : memref<64x128xbf16, #tpu.memory_space<vmem>>, vector<64x128xbf16>
    %c0_14 = arith.constant 0 : index
    %c0_15 = arith.constant 0 : index
    %20 = vector.load %arg7[%c0_14, %c0_15] : memref<1x128xbf16, #tpu.memory_space<vmem>>, vector<1x128xbf16>
    %21 = arith.extf %20 : vector<1x128xbf16> to vector<1x128xf32>
    %22 = arith.truncf %18 : vector<8x64xf32> to vector<8x64xbf16>
    %cst_16 = arith.constant dense<0.000000e+00> : vector<8x128xf32>
    %23 = tpu.matmul %22, %19, %cst_16 {dimension_numbers = #tpu.dot_dimension_numbers<[1], [0], [0], [1], [0, 0, 1, 1], [], []>} : vector<8x64xbf16>, vector<64x128xbf16>, vector<8x128xf32> -> vector<8x128xf32>
    %24 = vector.broadcast %21 : vector<1x128xf32> to vector<8x128xf32>
    %25 = arith.addf %23, %24 : vector<8x128xf32>
    %c0_17 = arith.constant 0 : index
    %c0_18 = arith.constant 0 : index
    %26 = vector.load %arg8[%c0_17, %c0_18] : memref<8x128xf32, #tpu.memory_space<vmem>>, vector<8x128xf32>
    tpu.vector_store %arg8[%c0_17, %c0_18], %25 {strides = array<i32>} : memref<8x128xf32, #tpu.memory_space<vmem>>, vector<8x128xf32>,
    return
  }
  func.func @transform_0(%arg0: i32) -> (i32, i32) {
    %c0_i32 = arith.constant 0 : i32
    %c0_i32_0 = arith.constant 0 : i32
    return %arg0, %c0_i32 : i32, i32
  }
  func.func @transform_1(%arg0: i32) -> (i32, i32) {
    %c0_i32 = arith.constant 0 : i32
    %c0_i32_0 = arith.constant 0 : i32
    %c0_i32_1 = arith.constant 0 : i32
    return %c0_i32, %c0_i32_0 : i32, i32
  }
  func.func @transform_2(%arg0: i32) -> (i32, i32) {
    %c0_i32 = arith.constant 0 : i32
    %c0_i32_0 = arith.constant 0 : i32
    %c0_i32_1 = arith.constant 0 : i32
    return %c0_i32, %c0_i32_0 : i32, i32
  }
  func.func @transform_3(%arg0: i32) -> (i32, i32) {
    %c0_i32 = arith.constant 0 : i32
    %c0_i32_0 = arith.constant 0 : i32
    %c0_i32_1 = arith.constant 0 : i32
    return %c0_i32, %c0_i32_0 : i32, i32
  }
  func.func @transform_4(%arg0: i32) -> (i32, i32) {
    %c0_i32 = arith.constant 0 : i32
    %c0_i32_0 = arith.constant 0 : i32
    %c0_i32_1 = arith.constant 0 : i32
    return %c0_i32, %c0_i32_0 : i32, i32
  }
  func.func @transform_5(%arg0: i32) -> (i32, i32) {
    %c0_i32 = arith.constant 0 : i32
    %c0_i32_0 = arith.constant 0 : i32
    %c0_i32_1 = arith.constant 0 : i32
    return %c0_i32, %c0_i32_0 : i32, i32
  }
  func.func @transform_6(%arg0: i32) -> (i32, i32) {
    %c0_i32 = arith.constant 0 : i32
    %c0_i32_0 = arith.constant 0 : i32
    %c0_i32_1 = arith.constant 0 : i32
    return %c0_i32, %c0_i32_0 : i32, i32
  }
  func.func @transform_7(%arg0: i32) -> (i32, i32) {
    %c0_i32 = arith.constant 0 : i32
    %c0_i32_0 = arith.constant 0 : i32
    return %arg0, %c0_i32 : i32, i32
  }
}

module attributes {stable_mosaic.version = 11 : i64} {
  func.func @_mlp_kernel(%arg0: i32, %arg1: memref<8x32xf32, #tpu.memory_space<vmem>>, %arg2: memref<32x64xbf16, #tpu.memory_space<vmem>>, %arg3: memref<1x64xbf16, #tpu.memory_space<vmem>>, %arg4: memref<64x64xbf16, #tpu.memory_space<vmem>>, %arg5: memref<1x64xbf16, #tpu.memory_space<vmem>>, %arg6: memref<64x128xbf16, #tpu.memory_space<vmem>>, %arg7: memref<1x128xbf16, #tpu.memory_space<vmem>>, %arg8: memref<8x128xf32, #tpu.memory_space<vmem>>) attributes {dimension_semantics = [#tpu.dimension_semantics<parallel>], iteration_bounds = array<i64: 2>, scalar_prefetch = 0 : i64, scratch_operands = 0 : i64, tpu.core_type = #tpu.core_type<tc>, window_params = [{transform_indices = @transform_0, window_bounds = array<i64: 8, 32>}, {pipeline_mode = #tpu.pipeline_mode<synchronous>, transform_indices = @transform_1, window_bounds = array<i64: 32, 64>}, {pipeline_mode = #tpu.pipeline_mode<synchronous>, transform_indices = @transform_2, window_bounds = array<i64: 1, 64>}, {pipeline_mode = #tpu.pipeline_mode<synchronous>, transform_indices = @transform_3, window_bounds = array<i64: 64, 64>}, {pipeline_mode = #tpu.pipeline_mode<synchronous>, transform_indices = @transform_4, window_bounds = array<i64: 1, 64>}, {pipeline_mode = #tpu.pipeline_mode<synchronous>, transform_indices = @transform_5, window_bounds = array<i64: 64, 128>}, {pipeline_mode = #tpu.pipeline_mode<synchronous>, transform_indices = @transform_6, window_bounds = array<i64: 1, 128>}, {transform_indices = @transform_7, window_bounds = array<i64: 8, 128>}]} {
    %c0 = arith.constant 0 : index
    %c0_0 = arith.constant 0 : index
    %0 = vector.load %arg1[%c0, %c0_0] : memref<8x32xf32, #tpu.memory_space<vmem>>, vector<8x32xf32>
    %c0_1 = arith.constant 0 : index
    %c0_2 = arith.constant 0 : index
    %1 = vector.load %arg2[%c0_1, %c0_2] : memref<32x64xbf16, #tpu.memory_space<vmem>>, vector<32x64xbf16>
    %c0_3 = arith.constant 0 : index
    %c0_4 = arith.constant 0 : index
    %2 = vector.load %arg3[%c0_3, %c0_4] : memref<1x64xbf16, #tpu.memory_space<vmem>>, vector<1x64xbf16>
    %3 = arith.extf %2 : vector<1x64xbf16> to vector<1x64xf32>
    %4 = arith.truncf %0 : vector<8x32xf32> to vector<8x32xbf16>
    %cst = arith.constant dense<0.000000e+00> : vector<8x64xf32>
    %5 = tpu.matmul %4, %1, %cst {dimension_numbers = #tpu.dot_dimension_numbers<[1], [0], [0], [1], [0, 0, 1, 1], [], []>} : vector<8x32xbf16>, vector<32x64xbf16>, vector<8x64xf32> -> vector<8x64xf32>
    %6 = vector.broadcast %3 : vector<1x64xf32> to vector<8x64xf32>
    %7 = arith.addf %5, %6 : vector<8x64xf32>
    %cst_5 = arith.constant 0.000000e+00 : f32
    %8 = vector.broadcast %cst_5 : f32 to vector<8x64xf32>
    %9 = arith.maximumf %7, %8 : vector<8x64xf32>
    %c0_6 = arith.constant 0 : index
    %c0_7 = arith.constant 0 : index
    %10 = vector.load %arg4[%c0_6, %c0_7] : memref<64x64xbf16, #tpu.memory_space<vmem>>, vector<64x64xbf16>
    %c0_8 = arith.constant 0 : index
    %c0_9 = arith.constant 0 : index
    %11 = vector.load %arg5[%c0_8, %c0_9] : memref<1x64xbf16, #tpu.memory_space<vmem>>, vector<1x64xbf16>
    %12 = arith.extf %11 : vector<1x64xbf16> to vector<1x64xf32>
    %13 = arith.truncf %9 : vector<8x64xf32> to vector<8x64xbf16>
    %cst_10 = arith.constant dense<0.000000e+00> : vector<8x64xf32>
    %14 = tpu.matmul %13, %10, %cst_10 {dimension_numbers = #tpu.dot_dimension_numbers<[1], [0], [0], [1], [0, 0, 1, 1], [], []>} : vector<8x64xbf16>, vector<64x64xbf16>, vector<8x64xf32> -> vector<8x64xf32>
    %15 = vector.broadcast %12 : vector<1x64xf32> to vector<8x64xf32>
    %16 = arith.addf %14, %15 : vector<8x64xf32>
    %cst_11 = arith.constant 0.000000e+00 : f32
    %17 = vector.broadcast %cst_11 : f32 to vector<8x64xf32>
    %18 = arith.maximumf %16, %17 : vector<8x64xf32>
    %c0_12 = arith.constant 0 : index
    %c0_13 = arith.constant 0 : index
    %19 = vector.load %arg6[%c0_12, %c0_13] : memref<64x128xbf16, #tpu.memory_space<vmem>>, vector<64x128xbf16>
    %c0_14 = arith.constant 0 : index
    %c0_15 = arith.constant 0 : index
    %20 = vector.load %arg7[%c0_14, %c0_15] : memref<1x128xbf16, #tpu.memory_space<vmem>>, vector<1x128xbf16>
    %21 = arith.extf %20 : vector<1x128xbf16> to vector<1x128xf32>
    %22 = arith.truncf %18 : vector<8x64xf32> to vector<8x64xbf16>
    %cst_16 = arith.constant dense<0.000000e+00> : vector<8x128xf32>
    %23 = tpu.matmul %22, %19, %cst_16 {dimension_numbers = #tpu.dot_dimension_numbers<[1], [0], [0], [1], [0, 0, 1, 1], [], []>} : vector<8x64xbf16>, vector<64x128xbf16>, vector<8x128xf32> -> vector<8x128xf32>
    %24 = vector.broadcast %21 : vector<1x128xf32> to vector<8x128xf32>
    %25 = arith.addf %23, %24 : vector<8x128xf32>
    %c0_17 = arith.constant 0 : index
    %c0_18 = arith.constant 0 : index
    %26 = vector.load %arg8[%c0_17, %c0_18] : memref<8x128xf32, #tpu.memory_space<vmem>>, vector<8x128xf32>
    tpu.vector_store %arg8[%c0_17, %c0_18], %25 {strides = array<i32>} : memref<8x128xf32, #tpu.memory_space<vmem>>, vector<8x128xf32>,
    return
  }
  func.func @transform_0(%arg0: i32) -> (i32, i32) {
    %c0_i32 = arith.constant 0 : i32
    %c0_i32_0 = arith.constant 0 : i32
    return %arg0, %c0_i32 : i32, i32
  }
  func.func @transform_1(%arg0: i32) -> (i32, i32) {
    %c0_i32 = arith.constant 0 : i32
    %c0_i32_0 = arith.constant 0 : i32
    %c0_i32_1 = arith.constant 0 : i32
    return %c0_i32, %c0_i32_0 : i32, i32
  }
  func.func @transform_2(%arg0: i32) -> (i32, i32) {
    %c0_i32 = arith.constant 0 : i32
    %c0_i32_0 = arith.constant 0 : i32
    %c0_i32_1 = arith.constant 0 : i32
    return %c0_i32, %c0_i32_0 : i32, i32
  }
  func.func @transform_3(%arg0: i32) -> (i32, i32) {
    %c0_i32 = arith.constant 0 : i32
    %c0_i32_0 = arith.constant 0 : i32
    %c0_i32_1 = arith.constant 0 : i32
    return %c0_i32, %c0_i32_0 : i32, i32
  }
  func.func @transform_4(%arg0: i32) -> (i32, i32) {
    %c0_i32 = arith.constant 0 : i32
    %c0_i32_0 = arith.constant 0 : i32
    %c0_i32_1 = arith.constant 0 : i32
    return %c0_i32, %c0_i32_0 : i32, i32
  }
  func.func @transform_5(%arg0: i32) -> (i32, i32) {
    %c0_i32 = arith.constant 0 : i32
    %c0_i32_0 = arith.constant 0 : i32
    %c0_i32_1 = arith.constant 0 : i32
    return %c0_i32, %c0_i32_0 : i32, i32
  }
  func.func @transform_6(%arg0: i32) -> (i32, i32) {
    %c0_i32 = arith.constant 0 : i32
    %c0_i32_0 = arith.constant 0 : i32
    %c0_i32_1 = arith.constant 0 : i32
    return %c0_i32, %c0_i32_0 : i32, i32
  }
  func.func @transform_7(%arg0: i32) -> (i32, i32) {
    %c0_i32 = arith.constant 0 : i32
    %c0_i32_0 = arith.constant 0 : i32
    return %arg0, %c0_i32 : i32, i32
  }
}

</mosaic_0001>

<bundles_post_ra>
// kernel: tpu_custom_call.1
= control target key start
LH: loop header
LB: loop body
LE: loop exit
PB: predicated region body
PF: predicated region fallthrough
CT: control target
= control target key end

     0   :  { %12 = vsyncpa [#allocation3], 0  ;;  %s1375_s0 = inlined_call_operand.hbm [shape: f32[16,32], index: 0, kind: input, shape index: {}]   ;;  %s1376_s1 = inlined_call_operand.hbm [shape: bf16[32,64], index: 1, kind: input, shape index: {}]   ;;  %s1377_s2 = inlined_call_operand.vmem [shape: bf16[1,64], index: 2, kind: input, shape index: {}]   ;;  %s1378_s3 = inlined_call_operand.hbm [shape: bf16[64,64], index: 3, kind: input, shape index: {}]   ;;  %s1379_s4 = inlined_call_operand.vmem [shape: bf16[1,64], index: 4, kind: input, shape index: {}]   ;;  %s1380_s5 = inlined_call_operand.hbm [shape: bf16[64,128], index: 5, kind: input, shape index: {}]   ;;  %s1381_s6 = inlined_call_operand.vmem [shape: bf16[1,128], index: 6, kind: input, shape index: {}]   ;;  %s1382_s7 = inlined_call_operand.hbm [shape: f32[16,128], index: 7, kind: output, shape index: {}]  }
   0x1   :  { %14 = vsyncpa [#allocation3 + $0x1], 0 }
   0x2   :  { %15 = vsyncpa [#allocation6], 0 }
   0x3   :  { %16 = vsyncpa [#allocation9], 0 }
   0x4   :  { %17 = vsyncpa [#allocation4], 0 }
   0x5   :  { %19 = vsyncpa [#allocation4 + $0x1], 0  ;;  %s1094_s24 = smov 0   ;;  %s1096_s25 = smov 0  }
   0x6   :  { %s1098_s26 = smov 0   ;;  %s1100_s27 = smov 0  }
   0x7 LB: > { %s1115_s28 = sadd.s32 4294967295, %s1043_s27   ;;  %s688_s29 = sadd.s32 4294967294, %s1043_s27   ;;  %s1043_s27 = sphi %s1100_s27, %s1408_s27   ;;  %s1039_s26 = sphi %s1098_s26, %s1407_s26   ;;  %s1035_s25 = sphi %s1096_s25, %s1406_s25   ;;  %s1031_s24 = sphi %s1094_s24, %s1405_s24  }
   0x8   : > { %p45_p0 = scmp.ne.s32.totalorder %s1035_s25, %s1031_s24  ;;  %p1383_p1 = scmp.eq.s32.totalorder %s1115_s28, 0 }
   0x9   : > { %p201_p3 = scmp.eq.s32.totalorder %s688_s29, 1  ;;  %p689_p5 = scmp.ge.s32.totalorder %s1043_s27, 1 }
   0xa   : > { %p1124_p4 = por %p1383_p1, %p45_p0  ;;  %p208_p7 = scmp.lt.s32.totalorder %s1043_s27, 3 }
   0xb   : > { %p1129_p6 = por %p201_p3, %p45_p0  ;;  %s1045_s10 = smov [#allocation5]  }
   0xc   : > { %s1387_s30 = scalar_select %p1124_p4, 1, 0 }
   0xd   : > { %s1388_s8 = scalar_select %p1129_p6, 1, 0 }
   0xe   : > { %p1134_p8 = pnand %p689_p5, %p208_p7  ;;  %s220_s11 = sshll.u32 %s1045_s10, 4  ;;  %s1138_s11 = int_to_ptr.vmem [resolvable:$true] %s220_s11 }
   0xf   : > { %1389 = sst [smem:[#allocation15_spill]] %s1388_s8  ;;  %s1046_s13 = smov [#allocation7]  }
  0x10   : > { %s1390_s9 = scalar_select %p1134_p8, 1, 0 }
  0x11   : > { %p780_p9 = pneg %p1134_p8  ;;  %s236_s14 = sshll.u32 %s1046_s13, 4  ;;  %s1149_s14 = int_to_ptr.vmem [resolvable:$true] %s236_s14 }
  0x12   : > { %s1047_s15 = smov [#allocation8]   ;;  %s855_s19 = scalar_lea.hbm %s1376_s1, 256 }
  0x13   : > { %p1145_p11 = pnand %p780_p9, %p1383_p1  ;;  %s1151_s16 = sshll.u32 %s1047_s15, 4  ;;  %s253_s16 = int_to_ptr.vmem [resolvable:$true] %s1151_s16 }
  0x14   : > { %p856_p12 = scmp.ne.s32.totalorder %s1376_s1, %s855_s19  ;;  %p862_p5 = scmp.lt.u32.totalorder %s855_s19, %s1376_s1 }
  0x15   : > { %p1161_p13 = pneg %p1145_p11 }
  0x17   : > { %p858_p0 = pnand %p1161_p13, %p856_p12 }
  0x19   : > { %p859_p3 = pneg %p858_p0 }
  0x1b   : > { %p864_p7 = pnand %p862_p5, %p859_p3 }
  0x1d   : > { %867 = shalt.err (!%p864_p7)
}
  0x1e   : > { %s868_s10 = scalar_lea.vmem %s1138_s11, 256  ;;  %p876_p2 = scmp.lt.s32.totalorder %s1138_s11, %s1138_s11 }
  0x1f   : > { %p869_p9 = scmp.ne.s32.totalorder %s1138_s11, %s868_s10  ;;  %p877_p6 = scmp.lt.s32.totalorder %s868_s10, %s868_s10 }
  0x21   : > { %p871_p10 = pnand %p869_p9, %p1161_p13  ;;  %p878_p12 = por %p877_p6, %p876_p2 }
  0x23   : > { %p872_p1 = pneg %p871_p10 }
  0x25   : > { %p879_p0 = pnand %p878_p12, %p872_p1 }
  0x27   : > { %882 = shalt.err (!%p879_p0)
}
  0x28   : > { %s1048_s13 = smov 64   ;;  %s1049_s15 = smov 4  }
  0x29   : > { %783 = dma.hbm_to_vmem [thread:$0]  (!%p1145_p11), %s1376_s1, 256, %s1138_s11, [#allocation6], %s1048_s13, %s1048_s13, %s1049_s15  }
  0x2a   : > { %s883_s21 = scalar_lea.hbm %s1378_s3, 512 }
  0x2b   : > { %p884_p1 = scmp.ne.s32.totalorder %s1378_s3, %s883_s21  ;;  %p890_p10 = scmp.lt.u32.totalorder %s883_s21, %s1378_s3 }
  0x2d   : > { %p886_p2 = pnand %p884_p1, %p1161_p13 }
  0x2f   : > { %p887_p6 = pneg %p886_p2 }
  0x31   : > { %p892_p3 = pnand %p890_p10, %p887_p6 }
  0x33   : > { %895 = shalt.err (!%p892_p3)
}
  0x34   : > { %s896_s11 = scalar_lea.vmem %s1149_s14, 512  ;;  %p904_p12 = scmp.lt.s32.totalorder %s1149_s14, %s1149_s14 }
  0x35   : > { %p897_p5 = scmp.ne.s32.totalorder %s1149_s14, %s896_s11  ;;  %p905_p0 = scmp.lt.s32.totalorder %s896_s11, %s896_s11 }
  0x37   : > { %p899_p7 = pnand %p897_p5, %p1161_p13  ;;  %p906_p1 = por %p905_p0, %p904_p12 }
  0x39   : > { %p900_p9 = pneg %p899_p7 }
  0x3b   : > { %p907_p2 = pnand %p906_p1, %p900_p9 }
  0x3d   : > { %910 = shalt.err (!%p907_p2)
}
  0x3e   : > { %786 = dma.hbm_to_vmem [thread:$0]  (!%p1145_p11), %s1378_s3, 512, %s1149_s14, [#allocation6], %s1048_s13, %s1048_s13, %s1049_s15  }
  0x3f   : > { %s911_s20 = scalar_lea.hbm %s1380_s5, 512 }
  0x40   : > { %p912_p6 = scmp.ne.s32.totalorder %s1380_s5, %s911_s20  ;;  %p918_p5 = scmp.lt.u32.totalorder %s911_s20, %s1380_s5 }
  0x42   : > { %p914_p10 = pnand %p912_p6, %p1161_p13 }
  0x44   : > { %p915_p3 = pneg %p914_p10 }
  0x46   : > { %p920_p7 = pnand %p918_p5, %p915_p3 }
  0x48   : > { %923 = shalt.err (!%p920_p7)
}
  0x49   : > { %s924_s11 = scalar_lea.vmem %s253_s16, 512  ;;  %p932_p1 = scmp.lt.s32.totalorder %s253_s16, %s253_s16 }
  0x4a   : > { %p925_p9 = scmp.ne.s32.totalorder %s253_s16, %s924_s11  ;;  %p933_p2 = scmp.lt.s32.totalorder %s924_s11, %s924_s11 }
  0x4c   : > { %p927_p12 = pnand %p925_p9, %p1161_p13  ;;  %p934_p4 = por %p933_p2, %p932_p1 }
  0x4e   : > { %p928_p0 = pneg %p927_p12 }
  0x50   : > { %p935_p8 = pnand %p934_p4, %p928_p0 }
  0x52   : > { %938 = shalt.err (!%p935_p8)
}
  0x53   : > { %789 = dma.hbm_to_vmem [thread:$0]  (!%p1145_p11), %s1380_s5, 512, %s253_s16, [#allocation9], %s1048_s13, %s1048_s13, %s1049_s15  }
  0x54   : > { %s1234_s22 = sadd.s32 1, %s1043_s27   ;;  %s32_s17 = sadd.s32 1, %s1039_s26 }
  0x55   : > { %s29_s12 = ssub.s32 %s1043_s27, %s1234_s22  ;;  %p39_p8 = scmp.ne.s32.totalorder %s1039_s26, %s1035_s25 }
  0x56   : > { %p30_p4 = scmp.eq.s32.totalorder %s29_s12, 0  ;;  %p40_p13 = scmp.eq.s32.totalorder %s1043_s27, 0 }
  0x57   : > { %p801_p6 = scmp.lt.s32.totalorder %s1043_s27, 2  ;;  %p1393_p3 = scmp.eq.s32.totalorder %s1115_s28, 1 }
  0x58   : > { %s1244_s18 = scalar_select %p30_p4, %s1039_s26, %s32_s17  }
  0x59   : > { %p41_p10 = por %p40_p13, %p39_p8  ;;  %p1248_p5 = por %p1393_p3, %p39_p8 }
  0x5a   : > { %s269_s20 = sand.u32 1, %s1039_s26   ;;  %s695_s21 = sshll.u32 %s1043_s27, 7 }
  0x5b   : > { %s694_s16 = sshll.u32 %s269_s20, 3  ;;  %s1257_s23 = scalar_lea.hbm %s1375_s0, %s695_s21 }
  0x5c   : > { %s273_s29 = scalar_lea.vmem [#allocation2], %s694_s16  ;;  %p1259_p11 = pnand %p801_p6, %p41_p10 }
  0x5d   : > { %s280_s10 = sshll.u32 %s273_s29, 4  ;;  %s270_s14 = scalar_lea.sflag [#allocation3], %s269_s20  ;;  %s1263_s10 = int_to_ptr.vmem [resolvable:$true] %s280_s10 }
  0x5e   : > { %s939_s8 = scalar_lea.hbm %s1257_s23, 128  ;;  %p941_p9 = pneg %p1259_p11 }
  0x5f   : > { %p940_p7 = scmp.ne.s32.totalorder %s1257_s23, %s939_s8  ;;  %s944_s21 = scalar_lea.hbm %s1375_s0, 256 }
  0x60   : > { %p945_p1 = scmp.lt.u32.totalorder %s1257_s23, %s1375_s0  ;;  %p946_p2 = scmp.lt.u32.totalorder %s944_s21, %s939_s8 }
  0x61   : > { %p942_p12 = pnand %p941_p9, %p940_p7  ;;  %p948_p8 = scmp.lt.u32.totalorder %s939_s8, %s1257_s23 }
  0x62   : > { %p947_p4 = por %p946_p2, %p945_p1 }
  0x63   : > { %p943_p0 = pneg %p942_p12 }
  0x64   : > { %p949_p13 = por %p948_p8, %p947_p4 }
  0x66   : > { %p950_p6 = pnand %p949_p13, %p943_p0 }
  0x68   : > { %953 = shalt.err (!%p950_p6)
}
  0x69   : > { %s954_s20 = scalar_lea.vmem %s1263_s10, 128  ;;  %s1050_s15 = smov [#allocation2]  }
  0x6a   : > { %p955_p10 = scmp.ne.s32.totalorder %s1263_s10, %s954_s20  ;;  %s959_s29 = sshll.u32 %s1050_s15, 4  ;;  %s960_s29 = int_to_ptr.vmem [resolvable:$false] %s959_s29 }
  0x6b   : > { %s961_s12 = scalar_lea.vmem %s960_s29, 256  ;;  %p962_p12 = scmp.lt.s32.totalorder %s1263_s10, %s960_s29 }
  0x6c   : > { %p957_p3 = pnand %p955_p10, %p941_p9  ;;  %p963_p1 = scmp.lt.s32.totalorder %s961_s12, %s954_s20 }
  0x6e   : > { %p958_p7 = pneg %p957_p3  ;;  %p964_p2 = por %p963_p1, %p962_p12 }
  0x70   : > { %p965_p4 = pnand %p964_p2, %p958_p7 }
  0x72   : > { %968 = shalt.err (!%p965_p4)
}
  0x73   : > { %793 = dma.hbm_to_vmem [thread:$0]  (!%p1259_p11), %s1257_s23, 128, %s1263_s10, %s270_s14  }
  0x74   : > { %p1396_p0 = scmp.ne.s32.totalorder %s1390_s9, 0 }
  0x75   : > { %s1293_s8 = sand.u32 (!%p1396_p0), 1, %s1035_s25   ;;  %p1397_p9 = scmp.ne.s32.totalorder (!%p1396_p0), %s1387_s30, 0 }
  0x76   : > { %289 = sbr.rel (%p1396_p0) target bundleno = 807 (0x327), region = 48  ;;  %s697_s17 = sshll.u32 (!%p1396_p0), %s1293_s8, 3 }
  0x77   : > { %s292_s21 = scalar_lea.sflag (!%p1396_p0), [#allocation3], %s1293_s8  ;;  %s295_s16 = scalar_lea.vmem (!%p1396_p0), [#allocation2], %s697_s17 }
  0x7d   : > { %1014 = dma.done.wait (%p1397_p9), %s292_s21, 128  }
  0x7e   : > { %1016 = vsyncadd (%p1397_p9), %s292_s21, 4294967168  ;;  %p1398_p11 = scmp.eq.s32.totalorder %s1115_s28, 0 }
  0x80   : > { %1018 = dma.done.wait (%p1398_p11), [#allocation6], 768   ;;  %p1399_p8 = pmov %p1398_p11 }
  0x82   : > { %1020 = vsyncadd (%p1399_p8), [#allocation6], 4294966528  ;;  %p1400_p13 = pmov %p1399_p8 }
  0x83   : > { %p1401_p6 = pmov %p1399_p8 }
  0x84   : > { %1022 = dma.done.wait (%p1400_p13), [#allocation9], 512  }
  0x85   : > { %1024 = vsyncadd (%p1401_p6), [#allocation9], 4294966784  ;;  %v1051_v0 = vmov 0.0   ;;  %vm1052_vm0 = vmmov 0   ;;  %v845_v1 = vld [vmem:[#allocation5] sm:$0xff]   ;;  %v846_v2 = vld [vmem:[#allocation5 + $0x8] sm:$0xff]   ;;  %v347_v11 = vlaneseq }
  0x86   : > { %732 = vmatprep.subr.bf16.mxu0 %v1051_v0  ;;  %736 = vmatprep.mubr.msk.bf16.mxu0 %vm1052_vm0, %v1051_v0  ;;  %v339_v3 = vld [vmem:[%s295_s16] sm:$0xff]  ;;  %vm363_vm1 = vcmask 261120   ;;  %v849_v7 = vld [vmem:[#allocation7 + $0x10] sm:$0xff]   ;;  %v850_v8 = vld [vmem:[#allocation7 + $0x18] sm:$0xff]   ;;  %vm447_vm2 = vcmask 523264   ;;  %s716_s13 = sshll.u32 %s1115_s28, 7 }
  0x87   : > { %740 = vmatprep.subr.bf16.mxu1 %v1051_v0  ;;  %748 = vmatprep.mubr.msk.bf16.mxu1 %vm1052_vm0, %v1051_v0  ;;  %v847_v4 = vld [vmem:[#allocation7] sm:$0xff]   ;;  %v848_v5 = vld [vmem:[#allocation7 + $0x8] sm:$0xff]   ;;  %v346_v6 = vpack.c.bf16 %v339_v3, %v339_v3  ;;  %v348_v12 = vshrl.u32 %v347_v11, 7  ;;  %v853_v24 = vld [vmem:[#allocation8 + $0x10] sm:$0xff]   ;;  %s337_s20 = scalar_lea.vmem [#allocation10], %s697_s17  ;;  %s1331_s21 = scalar_lea.hbm %s1382_s7, %s716_s13 }
  0x88   : > { %733 = vmatpush3.bf16.msra.mxu0 %v845_v1  ;;  %741 = vmatpush3.bf16.msra.mxu1 %v847_v4  ;;  %v851_v9 = vld [vmem:[#allocation8] sm:$0xff]   ;;  %v852_v10 = vld [vmem:[#allocation8 + $0x8] sm:$0xff]   ;;  %v854_v25 = vld [vmem:[#allocation8 + $0x18] sm:$0xff]   ;;  %s589_s15 = sshll.u32 %s337_s20, 4  ;;  %s576_s28 = scalar_lea.sflag [#allocation4], %s1293_s8  ;;  %s1333_s15 = int_to_ptr.vmem [resolvable:$true] %s589_s15 }
  0x89   : > { %734 = vmatprep.subr.bf16.mxu0 %v1051_v0  ;;  %742 = vmatprep.subr.bf16.mxu1 %v1051_v0  ;;  %v344_v13 = vld [vmem:[%s1377_s2] sm:$0x1]  ;;  %v349_v15 = vsub.s32 0, %v348_v12  ;;  %s969_s16 = scalar_lea.vmem %s1333_s15, 128  ;;  %s1053_s17 = smov [#allocation10]  }
  0x8a   : > { %v345_v14 = vunpack.c.l.bf16 %v344_v13  ;;  %v416_v26 = vld [vmem:[%s1379_s4] sm:$0x1]  ;;  %p970_p10 = scmp.ne.s32.totalorder %s1333_s15, %s969_s16  ;;  %s973_s30 = sshll.u32 %s1053_s17, 4  ;;  %s974_s30 = int_to_ptr.vmem [resolvable:$false] %s973_s30 }
  0x8b   : > { %v417_v27 = vunpack.c.l.bf16 %v416_v26  ;;  %v500_v36 = vld [vmem:[%s1381_s6] sm:$0x1]  ;;  %s975_s9 = scalar_lea.vmem %s974_s30, 256  ;;  %p976_p12 = scmp.lt.s32.totalorder %s1333_s15, %s974_s30 }
  0x8c   : > { %735 = vmatpush3.bf16.msra.mxu0 %v846_v2  ;;  %743 = vmatpush3.bf16.msra.mxu1 %v848_v5  ;;  %v350_v16 = vrot.slane %v345_v14, %v349_v15  ;;  %v501_v37 = vunpack.c.l.bf16 %v500_v36  ;;  %p971_p3 = pnand %p970_p10, %p1248_p5  ;;  %p977_p1 = scmp.lt.s32.totalorder %s975_s9, %s969_s16 }
  0x8d   : > { %752 = vmatprep.subr.bf16.mxu0 %v1051_v0  ;;  %744 = vmatprep.subr.bf16.mxu1 %v1051_v0  ;;  %v422_v28 = vrot.slane %v417_v27, %v349_v15 }
  0x8e   : > { %v506_v38 = vrot.slane %v501_v37, %v349_v15  ;;  %p972_p7 = pneg %p971_p3  ;;  %p978_p2 = por %p977_p1, %p976_p12 }
  0x8f   : > { %737 = vmatmul.mubr.msk.bf16.vlgmr.msra.gmra.mrb[0].mxu0 %vm363_vm1, %v346_v6 }
  0x90   : > { %760 = vmatprep.mubr.msk.bf16.mxu0 %vm1052_vm0, %v1051_v0  ;;  %745 = vmatpush3.bf16.msra.mxu1 %v849_v7  ;;  %p979_p4 = pnand %p978_p2, %p972_p7 }
  0x91   : > { %746 = vmatprep.subr.bf16.mxu1 %v1051_v0  ;;  %753 = vmatpush3.bf16.msra.mxu0 %v851_v9 }
  0x92   : > { %754 = vmatprep.subr.bf16.mxu0 %v1051_v0 }
  0x94   : > { %747 = vmatpush3.bf16.msra.mxu1 %v850_v8 }
  0x95   : > { %755 = vmatpush3.bf16.msra.mxu0 %v852_v10 }
  0x96   : > { %756 = vmatprep.subr.bf16.mxu0 %v1051_v0 }
  0x99   : > { %757 = vmatpush3.bf16.msra.mxu0 %v853_v24 }
  0x9a   : > { %758 = vmatprep.subr.bf16.mxu0 %v1051_v0 }
  0x9d   : > { %759 = vmatpush3.bf16.msra.mxu0 %v854_v25 }
 0x162   : > { %v401_v17 = vpop.f32.mrb[0].mxu0 }
 0x163   : > { %v402_v18 = vadd.f32 %v401_v17, %v350_v16  ;;  %v738_v19 = vpop.f32.mrb[1].mxu0 }
 0x164   : > { %v404_v20 = vpop.f32.mrb[2].mxu0 }
 0x165   : > { %v407_v21 = vmax.f32 %v402_v18, 0.0  ;;  %v739_v22 = vpop.f32.mrb[3].mxu0 }
 0x167   : > { %v418_v23 = vpack.c.bf16 %v407_v21, %v407_v21 }
 0x169   : > { %749 = vmatmul.mubr.msk.bf16.vlgmr.msra.gmra.mrb[0].mxu1 %vm447_vm2, %v418_v23 }
 0x23c   : > { %v485_v29 = vpop.f32.mrb[0].mxu1 }
 0x23d   : > { %v486_v30 = vadd.f32 %v485_v29, %v422_v28  ;;  %v750_v31 = vpop.f32.mrb[1].mxu1 }
 0x23e   : > { %v488_v32 = vpop.f32.mrb[2].mxu1 }
 0x23f   : > { %v491_v33 = vmax.f32 %v486_v30, 0.0  ;;  %v751_v34 = vpop.f32.mrb[3].mxu1 }
 0x241   : > { %v502_v35 = vpack.c.bf16 %v491_v33, %v491_v33 }
 0x243   : > { %761 = vmatmul.mubr.msk.bf16.vlgmr.msra.gmra.mrb[4].mxu0 %vm447_vm2, %v502_v35 }
 0x316   : > { %v568_v39 = vpop.f32.mrb[4].mxu0 }
 0x317   : > { %v569_v40 = vadd.f32 %v568_v39, %v506_v38  ;;  %v762_v41 = vpop.f32.mrb[5].mxu0 }
 0x318   : > { %v571_v42 = vpop.f32.mrb[6].mxu0 }
 0x319   : > { %574 = vst [vmem:[%s337_s20] sm:$0xff] %v569_v40  ;;  %v763_v43 = vpop.f32.mrb[7].mxu0 }
 0x31a   : > { %982 = shalt.err (!%p979_p4)
}
 0x31b   : > { %s983_s8 = scalar_lea.hbm %s1331_s21, 128  ;;  %s987_s11 = scalar_lea.hbm %s1382_s7, 256 }
 0x31c   : > { %p984_p0 = scmp.ne.s32.totalorder %s1331_s21, %s983_s8  ;;  %p988_p8 = scmp.lt.u32.totalorder %s1331_s21, %s1382_s7 }
 0x31d   : > { %p989_p13 = scmp.lt.u32.totalorder %s987_s11, %s983_s8  ;;  %p991_p10 = scmp.lt.u32.totalorder %s983_s8, %s1331_s21 }
 0x31e   : > { %p985_p9 = pnand %p984_p0, %p1248_p5 }
 0x31f   : > { %p990_p6 = por %p989_p13, %p988_p8 }
 0x320   : > { %p986_p11 = pneg %p985_p9 }
 0x321   : > { %p992_p3 = por %p991_p10, %p990_p6 }
 0x323   : > { %p993_p7 = pnand %p992_p3, %p986_p11 }
 0x325   : > { %996 = shalt.err (!%p993_p7)
}
 0x326   : > { %778 = dma.vmem_to_hbm [thread:$0]  (%p1248_p5), %s1333_s15, 128, %s1331_s21, %s576_s28  }
 0x327 PF: > { %s1402_s20 = sld [smem:[#allocation15_spill]]  ;;  %s601_s29 = sand.u32 1, %s1031_s24  }
 0x328   : > { %p1404_p1 = scmp.ge.s32.totalorder %s1043_s27, 2  ;;  %s602_s12 = scalar_lea.sflag [#allocation4], %s601_s29 }
 0x32d   : > { %p1403_p12 = scmp.ne.s32.totalorder %s1402_s20, 0 }
 0x32f   : > { %p795_p2 = pnand %p1404_p1, %p1403_p12 }
 0x331   : > { %1026 = dma.done.wait (!%p795_p2), %s602_s12, 128  }
 0x332   : > { %1028 = vsyncadd (!%p795_p2), %s602_s12, 4294967168  ;;  %p22_p4 = scmp.ge.s32.totalorder %s1234_s22, 4   ;;  %s1405_s24 = smov %s1035_s25 }
 0x333   : > { %s1406_s25 = smov %s1039_s26  ;;  %s1407_s26 = smov %s1244_s18 }
 0x334   : > { %s1408_s27 = smov %s1234_s22  ;;  %24 = sbr.rel (!%p22_p4) target bundleno = 7 (0x7), region = 105 }
 0x33b   :  { %607 = vsyncpa [#allocation3], 1 }
 0x33c   :  { %609 = vsyncpa [#allocation3 + $0x1], 1 }
 0x33d   :  { %610 = vsyncpa [#allocation6], 1 }
 0x33e   :  { %611 = vsyncpa [#allocation9], 1 }
 0x33f   :  { %612 = vsyncpa [#allocation4], 1 }
 0x340   :  { %614 = vsyncpa [#allocation4 + $0x1], 1 }

// kernel: tpu_custom_call.1
= control target key start
LH: loop header
LB: loop body
LE: loop exit
PB: predicated region body
PF: predicated region fallthrough
CT: control target
= control target key end

     0   :  { %12 = vsyncpa [#allocation3], 0  ;;  %s1375_s0 = inlined_call_operand.hbm [shape: f32[16,32], index: 0, kind: input, shape index: {}]   ;;  %s1376_s1 = inlined_call_operand.hbm [shape: bf16[32,64], index: 1, kind: input, shape index: {}]   ;;  %s1377_s2 = inlined_call_operand.vmem [shape: bf16[1,64], index: 2, kind: input, shape index: {}]   ;;  %s1378_s3 = inlined_call_operand.hbm [shape: bf16[64,64], index: 3, kind: input, shape index: {}]   ;;  %s1379_s4 = inlined_call_operand.vmem [shape: bf16[1,64], index: 4, kind: input, shape index: {}]   ;;  %s1380_s5 = inlined_call_operand.hbm [shape: bf16[64,128], index: 5, kind: input, shape index: {}]   ;;  %s1381_s6 = inlined_call_operand.vmem [shape: bf16[1,128], index: 6, kind: input, shape index: {}]   ;;  %s1382_s7 = inlined_call_operand.hbm [shape: f32[16,128], index: 7, kind: output, shape index: {}]  }
   0x1   :  { %14 = vsyncpa [#allocation3 + $0x1], 0 }
   0x2   :  { %15 = vsyncpa [#allocation6], 0 }
   0x3   :  { %16 = vsyncpa [#allocation9], 0 }
   0x4   :  { %17 = vsyncpa [#allocation4], 0 }
   0x5   :  { %19 = vsyncpa [#allocation4 + $0x1], 0  ;;  %s1094_s24 = smov 0   ;;  %s1096_s25 = smov 0  }
   0x6   :  { %s1098_s26 = smov 0   ;;  %s1100_s27 = smov 0  }
   0x7 LB: > { %s1115_s28 = sadd.s32 4294967295, %s1043_s27   ;;  %s688_s29 = sadd.s32 4294967294, %s1043_s27   ;;  %s1043_s27 = sphi %s1100_s27, %s1408_s27   ;;  %s1039_s26 = sphi %s1098_s26, %s1407_s26   ;;  %s1035_s25 = sphi %s1096_s25, %s1406_s25   ;;  %s1031_s24 = sphi %s1094_s24, %s1405_s24  }
   0x8   : > { %p45_p0 = scmp.ne.s32.totalorder %s1035_s25, %s1031_s24  ;;  %p1383_p1 = scmp.eq.s32.totalorder %s1115_s28, 0 }
   0x9   : > { %p201_p3 = scmp.eq.s32.totalorder %s688_s29, 1  ;;  %p689_p5 = scmp.ge.s32.totalorder %s1043_s27, 1 }
   0xa   : > { %p1124_p4 = por %p1383_p1, %p45_p0  ;;  %p208_p7 = scmp.lt.s32.totalorder %s1043_s27, 3 }
   0xb   : > { %p1129_p6 = por %p201_p3, %p45_p0  ;;  %s1045_s10 = smov [#allocation5]  }
   0xc   : > { %s1387_s30 = scalar_select %p1124_p4, 1, 0 }
   0xd   : > { %s1388_s8 = scalar_select %p1129_p6, 1, 0 }
   0xe   : > { %p1134_p8 = pnand %p689_p5, %p208_p7  ;;  %s220_s11 = sshll.u32 %s1045_s10, 4  ;;  %s1138_s11 = int_to_ptr.vmem [resolvable:$true] %s220_s11 }
   0xf   : > { %1389 = sst [smem:[#allocation15_spill]] %s1388_s8  ;;  %s1046_s13 = smov [#allocation7]  }
  0x10   : > { %s1390_s9 = scalar_select %p1134_p8, 1, 0 }
  0x11   : > { %p780_p9 = pneg %p1134_p8  ;;  %s236_s14 = sshll.u32 %s1046_s13, 4  ;;  %s1149_s14 = int_to_ptr.vmem [resolvable:$true] %s236_s14 }
  0x12   : > { %s1047_s15 = smov [#allocation8]   ;;  %s855_s19 = scalar_lea.hbm %s1376_s1, 256 }
  0x13   : > { %p1145_p11 = pnand %p780_p9, %p1383_p1  ;;  %s1151_s16 = sshll.u32 %s1047_s15, 4  ;;  %s253_s16 = int_to_ptr.vmem [resolvable:$true] %s1151_s16 }
  0x14   : > { %p856_p12 = scmp.ne.s32.totalorder %s1376_s1, %s855_s19  ;;  %p862_p5 = scmp.lt.u32.totalorder %s855_s19, %s1376_s1 }
  0x15   : > { %p1161_p13 = pneg %p1145_p11 }
  0x17   : > { %p858_p0 = pnand %p1161_p13, %p856_p12 }
  0x19   : > { %p859_p3 = pneg %p858_p0 }
  0x1b   : > { %p864_p7 = pnand %p862_p5, %p859_p3 }
  0x1d   : > { %867 = shalt.err (!%p864_p7)
}
  0x1e   : > { %s868_s10 = scalar_lea.vmem %s1138_s11, 256  ;;  %p876_p2 = scmp.lt.s32.totalorder %s1138_s11, %s1138_s11 }
  0x1f   : > { %p869_p9 = scmp.ne.s32.totalorder %s1138_s11, %s868_s10  ;;  %p877_p6 = scmp.lt.s32.totalorder %s868_s10, %s868_s10 }
  0x21   : > { %p871_p10 = pnand %p869_p9, %p1161_p13  ;;  %p878_p12 = por %p877_p6, %p876_p2 }
  0x23   : > { %p872_p1 = pneg %p871_p10 }
  0x25   : > { %p879_p0 = pnand %p878_p12, %p872_p1 }
  0x27   : > { %882 = shalt.err (!%p879_p0)
}
  0x28   : > { %s1048_s13 = smov 64   ;;  %s1049_s15 = smov 4  }
  0x29   : > { %783 = dma.hbm_to_vmem [thread:$0]  (!%p1145_p11), %s1376_s1, 256, %s1138_s11, [#allocation6], %s1048_s13, %s1048_s13, %s1049_s15  }
  0x2a   : > { %s883_s21 = scalar_lea.hbm %s1378_s3, 512 }
  0x2b   : > { %p884_p1 = scmp.ne.s32.totalorder %s1378_s3, %s883_s21  ;;  %p890_p10 = scmp.lt.u32.totalorder %s883_s21, %s1378_s3 }
  0x2d   : > { %p886_p2 = pnand %p884_p1, %p1161_p13 }
  0x2f   : > { %p887_p6 = pneg %p886_p2 }
  0x31   : > { %p892_p3 = pnand %p890_p10, %p887_p6 }
  0x33   : > { %895 = shalt.err (!%p892_p3)
}
  0x34   : > { %s896_s11 = scalar_lea.vmem %s1149_s14, 512  ;;  %p904_p12 = scmp.lt.s32.totalorder %s1149_s14, %s1149_s14 }
  0x35   : > { %p897_p5 = scmp.ne.s32.totalorder %s1149_s14, %s896_s11  ;;  %p905_p0 = scmp.lt.s32.totalorder %s896_s11, %s896_s11 }
  0x37   : > { %p899_p7 = pnand %p897_p5, %p1161_p13  ;;  %p906_p1 = por %p905_p0, %p904_p12 }
  0x39   : > { %p900_p9 = pneg %p899_p7 }
  0x3b   : > { %p907_p2 = pnand %p906_p1, %p900_p9 }
  0x3d   : > { %910 = shalt.err (!%p907_p2)
}
  0x3e   : > { %786 = dma.hbm_to_vmem [thread:$0]  (!%p1145_p11), %s1378_s3, 512, %s1149_s14, [#allocation6], %s1048_s13, %s1048_s13, %s1049_s15  }
  0x3f   : > { %s911_s20 = scalar_lea.hbm %s1380_s5, 512 }
  0x40   : > { %p912_p6 = scmp.ne.s32.totalorder %s1380_s5, %s911_s20  ;;  %p918_p5 = scmp.lt.u32.totalorder %s911_s20, %s1380_s5 }
  0x42   : > { %p914_p10 = pnand %p912_p6, %p1161_p13 }
  0x44   : > { %p915_p3 = pneg %p914_p10 }
  0x46   : > { %p920_p7 = pnand %p918_p5, %p915_p3 }
  0x48   : > { %923 = shalt.err (!%p920_p7)
}
  0x49   : > { %s924_s11 = scalar_lea.vmem %s253_s16, 512  ;;  %p932_p1 = scmp.lt.s32.totalorder %s253_s16, %s253_s16 }
  0x4a   : > { %p925_p9 = scmp.ne.s32.totalorder %s253_s16, %s924_s11  ;;  %p933_p2 = scmp.lt.s32.totalorder %s924_s11, %s924_s11 }
  0x4c   : > { %p927_p12 = pnand %p925_p9, %p1161_p13  ;;  %p934_p4 = por %p933_p2, %p932_p1 }
  0x4e   : > { %p928_p0 = pneg %p927_p12 }
  0x50   : > { %p935_p8 = pnand %p934_p4, %p928_p0 }
  0x52   : > { %938 = shalt.err (!%p935_p8)
}
  0x53   : > { %789 = dma.hbm_to_vmem [thread:$0]  (!%p1145_p11), %s1380_s5, 512, %s253_s16, [#allocation9], %s1048_s13, %s1048_s13, %s1049_s15  }
  0x54   : > { %s1234_s22 = sadd.s32 1, %s1043_s27   ;;  %s32_s17 = sadd.s32 1, %s1039_s26 }
  0x55   : > { %s29_s12 = ssub.s32 %s1043_s27, %s1234_s22  ;;  %p39_p8 = scmp.ne.s32.totalorder %s1039_s26, %s1035_s25 }
  0x56   : > { %p30_p4 = scmp.eq.s32.totalorder %s29_s12, 0  ;;  %p40_p13 = scmp.eq.s32.totalorder %s1043_s27, 0 }
  0x57   : > { %p801_p6 = scmp.lt.s32.totalorder %s1043_s27, 2  ;;  %p1393_p3 = scmp.eq.s32.totalorder %s1115_s28, 1 }
  0x58   : > { %s1244_s18 = scalar_select %p30_p4, %s1039_s26, %s32_s17  }
  0x59   : > { %p41_p10 = por %p40_p13, %p39_p8  ;;  %p1248_p5 = por %p1393_p3, %p39_p8 }
  0x5a   : > { %s269_s20 = sand.u32 1, %s1039_s26   ;;  %s695_s21 = sshll.u32 %s1043_s27, 7 }
  0x5b   : > { %s694_s16 = sshll.u32 %s269_s20, 3  ;;  %s1257_s23 = scalar_lea.hbm %s1375_s0, %s695_s21 }
  0x5c   : > { %s273_s29 = scalar_lea.vmem [#allocation2], %s694_s16  ;;  %p1259_p11 = pnand %p801_p6, %p41_p10 }
  0x5d   : > { %s280_s10 = sshll.u32 %s273_s29, 4  ;;  %s270_s14 = scalar_lea.sflag [#allocation3], %s269_s20  ;;  %s1263_s10 = int_to_ptr.vmem [resolvable:$true] %s280_s10 }
  0x5e   : > { %s939_s8 = scalar_lea.hbm %s1257_s23, 128  ;;  %p941_p9 = pneg %p1259_p11 }
  0x5f   : > { %p940_p7 = scmp.ne.s32.totalorder %s1257_s23, %s939_s8  ;;  %s944_s21 = scalar_lea.hbm %s1375_s0, 256 }
  0x60   : > { %p945_p1 = scmp.lt.u32.totalorder %s1257_s23, %s1375_s0  ;;  %p946_p2 = scmp.lt.u32.totalorder %s944_s21, %s939_s8 }
  0x61   : > { %p942_p12 = pnand %p941_p9, %p940_p7  ;;  %p948_p8 = scmp.lt.u32.totalorder %s939_s8, %s1257_s23 }
  0x62   : > { %p947_p4 = por %p946_p2, %p945_p1 }
  0x63   : > { %p943_p0 = pneg %p942_p12 }
  0x64   : > { %p949_p13 = por %p948_p8, %p947_p4 }
  0x66   : > { %p950_p6 = pnand %p949_p13, %p943_p0 }
  0x68   : > { %953 = shalt.err (!%p950_p6)
}
  0x69   : > { %s954_s20 = scalar_lea.vmem %s1263_s10, 128  ;;  %s1050_s15 = smov [#allocation2]  }
  0x6a   : > { %p955_p10 = scmp.ne.s32.totalorder %s1263_s10, %s954_s20  ;;  %s959_s29 = sshll.u32 %s1050_s15, 4  ;;  %s960_s29 = int_to_ptr.vmem [resolvable:$false] %s959_s29 }
  0x6b   : > { %s961_s12 = scalar_lea.vmem %s960_s29, 256  ;;  %p962_p12 = scmp.lt.s32.totalorder %s1263_s10, %s960_s29 }
  0x6c   : > { %p957_p3 = pnand %p955_p10, %p941_p9  ;;  %p963_p1 = scmp.lt.s32.totalorder %s961_s12, %s954_s20 }
  0x6e   : > { %p958_p7 = pneg %p957_p3  ;;  %p964_p2 = por %p963_p1, %p962_p12 }
  0x70   : > { %p965_p4 = pnand %p964_p2, %p958_p7 }
  0x72   : > { %968 = shalt.err (!%p965_p4)
}
  0x73   : > { %793 = dma.hbm_to_vmem [thread:$0]  (!%p1259_p11), %s1257_s23, 128, %s1263_s10, %s270_s14  }
  0x74   : > { %p1396_p0 = scmp.ne.s32.totalorder %s1390_s9, 0 }
  0x75   : > { %s1293_s8 = sand.u32 (!%p1396_p0), 1, %s1035_s25   ;;  %p1397_p9 = scmp.ne.s32.totalorder (!%p1396_p0), %s1387_s30, 0 }
  0x76   : > { %289 = sbr.rel (%p1396_p0) target bundleno = 807 (0x327), region = 48  ;;  %s697_s17 = sshll.u32 (!%p1396_p0), %s1293_s8, 3 }
  0x77   : > { %s292_s21 = scalar_lea.sflag (!%p1396_p0), [#allocation3], %s1293_s8  ;;  %s295_s16 = scalar_lea.vmem (!%p1396_p0), [#allocation2], %s697_s17 }
  0x7d   : > { %1014 = dma.done.wait (%p1397_p9), %s292_s21, 128  }
  0x7e   : > { %1016 = vsyncadd (%p1397_p9), %s292_s21, 4294967168  ;;  %p1398_p11 = scmp.eq.s32.totalorder %s1115_s28, 0 }
  0x80   : > { %1018 = dma.done.wait (%p1398_p11), [#allocation6], 768   ;;  %p1399_p8 = pmov %p1398_p11 }
  0x82   : > { %1020 = vsyncadd (%p1399_p8), [#allocation6], 4294966528  ;;  %p1400_p13 = pmov %p1399_p8 }
  0x83   : > { %p1401_p6 = pmov %p1399_p8 }
  0x84   : > { %1022 = dma.done.wait (%p1400_p13), [#allocation9], 512  }
  0x85   : > { %1024 = vsyncadd (%p1401_p6), [#allocation9], 4294966784  ;;  %v1051_v0 = vmov 0.0   ;;  %vm1052_vm0 = vmmov 0   ;;  %v845_v1 = vld [vmem:[#allocation5] sm:$0xff]   ;;  %v846_v2 = vld [vmem:[#allocation5 + $0x8] sm:$0xff]   ;;  %v347_v11 = vlaneseq }
  0x86   : > { %732 = vmatprep.subr.bf16.mxu0 %v1051_v0  ;;  %736 = vmatprep.mubr.msk.bf16.mxu0 %vm1052_vm0, %v1051_v0  ;;  %v339_v3 = vld [vmem:[%s295_s16] sm:$0xff]  ;;  %vm363_vm1 = vcmask 261120   ;;  %v849_v7 = vld [vmem:[#allocation7 + $0x10] sm:$0xff]   ;;  %v850_v8 = vld [vmem:[#allocation7 + $0x18] sm:$0xff]   ;;  %vm447_vm2 = vcmask 523264   ;;  %s716_s13 = sshll.u32 %s1115_s28, 7 }
  0x87   : > { %740 = vmatprep.subr.bf16.mxu1 %v1051_v0  ;;  %748 = vmatprep.mubr.msk.bf16.mxu1 %vm1052_vm0, %v1051_v0  ;;  %v847_v4 = vld [vmem:[#allocation7] sm:$0xff]   ;;  %v848_v5 = vld [vmem:[#allocation7 + $0x8] sm:$0xff]   ;;  %v346_v6 = vpack.c.bf16 %v339_v3, %v339_v3  ;;  %v348_v12 = vshrl.u32 %v347_v11, 7  ;;  %v853_v24 = vld [vmem:[#allocation8 + $0x10] sm:$0xff]   ;;  %s337_s20 = scalar_lea.vmem [#allocation10], %s697_s17  ;;  %s1331_s21 = scalar_lea.hbm %s1382_s7, %s716_s13 }
  0x88   : > { %733 = vmatpush3.bf16.msra.mxu0 %v845_v1  ;;  %741 = vmatpush3.bf16.msra.mxu1 %v847_v4  ;;  %v851_v9 = vld [vmem:[#allocation8] sm:$0xff]   ;;  %v852_v10 = vld [vmem:[#allocation8 + $0x8] sm:$0xff]   ;;  %v854_v25 = vld [vmem:[#allocation8 + $0x18] sm:$0xff]   ;;  %s589_s15 = sshll.u32 %s337_s20, 4  ;;  %s576_s28 = scalar_lea.sflag [#allocation4], %s1293_s8  ;;  %s1333_s15 = int_to_ptr.vmem [resolvable:$true] %s589_s15 }
  0x89   : > { %734 = vmatprep.subr.bf16.mxu0 %v1051_v0  ;;  %742 = vmatprep.subr.bf16.mxu1 %v1051_v0  ;;  %v344_v13 = vld [vmem:[%s1377_s2] sm:$0x1]  ;;  %v349_v15 = vsub.s32 0, %v348_v12  ;;  %s969_s16 = scalar_lea.vmem %s1333_s15, 128  ;;  %s1053_s17 = smov [#allocation10]  }
  0x8a   : > { %v345_v14 = vunpack.c.l.bf16 %v344_v13  ;;  %v416_v26 = vld [vmem:[%s1379_s4] sm:$0x1]  ;;  %p970_p10 = scmp.ne.s32.totalorder %s1333_s15, %s969_s16  ;;  %s973_s30 = sshll.u32 %s1053_s17, 4  ;;  %s974_s30 = int_to_ptr.vmem [resolvable:$false] %s973_s30 }
  0x8b   : > { %v417_v27 = vunpack.c.l.bf16 %v416_v26  ;;  %v500_v36 = vld [vmem:[%s1381_s6] sm:$0x1]  ;;  %s975_s9 = scalar_lea.vmem %s974_s30, 256  ;;  %p976_p12 = scmp.lt.s32.totalorder %s1333_s15, %s974_s30 }
  0x8c   : > { %735 = vmatpush3.bf16.msra.mxu0 %v846_v2  ;;  %743 = vmatpush3.bf16.msra.mxu1 %v848_v5  ;;  %v350_v16 = vrot.slane %v345_v14, %v349_v15  ;;  %v501_v37 = vunpack.c.l.bf16 %v500_v36  ;;  %p971_p3 = pnand %p970_p10, %p1248_p5  ;;  %p977_p1 = scmp.lt.s32.totalorder %s975_s9, %s969_s16 }
  0x8d   : > { %752 = vmatprep.subr.bf16.mxu0 %v1051_v0  ;;  %744 = vmatprep.subr.bf16.mxu1 %v1051_v0  ;;  %v422_v28 = vrot.slane %v417_v27, %v349_v15 }
  0x8e   : > { %v506_v38 = vrot.slane %v501_v37, %v349_v15  ;;  %p972_p7 = pneg %p971_p3  ;;  %p978_p2 = por %p977_p1, %p976_p12 }
  0x8f   : > { %737 = vmatmul.mubr.msk.bf16.vlgmr.msra.gmra.mrb[0].mxu0 %vm363_vm1, %v346_v6 }
  0x90   : > { %760 = vmatprep.mubr.msk.bf16.mxu0 %vm1052_vm0, %v1051_v0  ;;  %745 = vmatpush3.bf16.msra.mxu1 %v849_v7  ;;  %p979_p4 = pnand %p978_p2, %p972_p7 }
  0x91   : > { %746 = vmatprep.subr.bf16.mxu1 %v1051_v0  ;;  %753 = vmatpush3.bf16.msra.mxu0 %v851_v9 }
  0x92   : > { %754 = vmatprep.subr.bf16.mxu0 %v1051_v0 }
  0x94   : > { %747 = vmatpush3.bf16.msra.mxu1 %v850_v8 }
  0x95   : > { %755 = vmatpush3.bf16.msra.mxu0 %v852_v10 }
  0x96   : > { %756 = vmatprep.subr.bf16.mxu0 %v1051_v0 }
  0x99   : > { %757 = vmatpush3.bf16.msra.mxu0 %v853_v24 }
  0x9a   : > { %758 = vmatprep.subr.bf16.mxu0 %v1051_v0 }
  0x9d   : > { %759 = vmatpush3.bf16.msra.mxu0 %v854_v25 }
 0x162   : > { %v401_v17 = vpop.f32.mrb[0].mxu0 }
 0x163   : > { %v402_v18 = vadd.f32 %v401_v17, %v350_v16  ;;  %v738_v19 = vpop.f32.mrb[1].mxu0 }
 0x164   : > { %v404_v20 = vpop.f32.mrb[2].mxu0 }
 0x165   : > { %v407_v21 = vmax.f32 %v402_v18, 0.0  ;;  %v739_v22 = vpop.f32.mrb[3].mxu0 }
 0x167   : > { %v418_v23 = vpack.c.bf16 %v407_v21, %v407_v21 }
 0x169   : > { %749 = vmatmul.mubr.msk.bf16.vlgmr.msra.gmra.mrb[0].mxu1 %vm447_vm2, %v418_v23 }
 0x23c   : > { %v485_v29 = vpop.f32.mrb[0].mxu1 }
 0x23d   : > { %v486_v30 = vadd.f32 %v485_v29, %v422_v28  ;;  %v750_v31 = vpop.f32.mrb[1].mxu1 }
 0x23e   : > { %v488_v32 = vpop.f32.mrb[2].mxu1 }
 0x23f   : > { %v491_v33 = vmax.f32 %v486_v30, 0.0  ;;  %v751_v34 = vpop.f32.mrb[3].mxu1 }
 0x241   : > { %v502_v35 = vpack.c.bf16 %v491_v33, %v491_v33 }
 0x243   : > { %761 = vmatmul.mubr.msk.bf16.vlgmr.msra.gmra.mrb[4].mxu0 %vm447_vm2, %v502_v35 }
 0x316   : > { %v568_v39 = vpop.f32.mrb[4].mxu0 }
 0x317   : > { %v569_v40 = vadd.f32 %v568_v39, %v506_v38  ;;  %v762_v41 = vpop.f32.mrb[5].mxu0 }
 0x318   : > { %v571_v42 = vpop.f32.mrb[6].mxu0 }
 0x319   : > { %574 = vst [vmem:[%s337_s20] sm:$0xff] %v569_v40  ;;  %v763_v43 = vpop.f32.mrb[7].mxu0 }
 0x31a   : > { %982 = shalt.err (!%p979_p4)
}
 0x31b   : > { %s983_s8 = scalar_lea.hbm %s1331_s21, 128  ;;  %s987_s11 = scalar_lea.hbm %s1382_s7, 256 }
 0x31c   : > { %p984_p0 = scmp.ne.s32.totalorder %s1331_s21, %s983_s8  ;;  %p988_p8 = scmp.lt.u32.totalorder %s1331_s21, %s1382_s7 }
 0x31d   : > { %p989_p13 = scmp.lt.u32.totalorder %s987_s11, %s983_s8  ;;  %p991_p10 = scmp.lt.u32.totalorder %s983_s8, %s1331_s21 }
 0x31e   : > { %p985_p9 = pnand %p984_p0, %p1248_p5 }
 0x31f   : > { %p990_p6 = por %p989_p13, %p988_p8 }
 0x320   : > { %p986_p11 = pneg %p985_p9 }
 0x321   : > { %p992_p3 = por %p991_p10, %p990_p6 }
 0x323   : > { %p993_p7 = pnand %p992_p3, %p986_p11 }
 0x325   : > { %996 = shalt.err (!%p993_p7)
}
 0x326   : > { %778 = dma.vmem_to_hbm [thread:$0]  (%p1248_p5), %s1333_s15, 128, %s1331_s21, %s576_s28  }
 0x327 PF: > { %s1402_s20 = sld [smem:[#allocation15_spill]]  ;;  %s601_s29 = sand.u32 1, %s1031_s24  }
 0x328   : > { %p1404_p1 = scmp.ge.s32.totalorder %s1043_s27, 2  ;;  %s602_s12 = scalar_lea.sflag [#allocation4], %s601_s29 }
 0x32d   : > { %p1403_p12 = scmp.ne.s32.totalorder %s1402_s20, 0 }
 0x32f   : > { %p795_p2 = pnand %p1404_p1, %p1403_p12 }
 0x331   : > { %1026 = dma.done.wait (!%p795_p2), %s602_s12, 128  }
 0x332   : > { %1028 = vsyncadd (!%p795_p2), %s602_s12, 4294967168  ;;  %p22_p4 = scmp.ge.s32.totalorder %s1234_s22, 4   ;;  %s1405_s24 = smov %s1035_s25 }
 0x333   : > { %s1406_s25 = smov %s1039_s26  ;;  %s1407_s26 = smov %s1244_s18 }
 0x334   : > { %s1408_s27 = smov %s1234_s22  ;;  %24 = sbr.rel (!%p22_p4) target bundleno = 7 (0x7), region = 105 }
 0x33b   :  { %607 = vsyncpa [#allocation3], 1 }
 0x33c   :  { %609 = vsyncpa [#allocation3 + $0x1], 1 }
 0x33d   :  { %610 = vsyncpa [#allocation6], 1 }
 0x33e   :  { %611 = vsyncpa [#allocation9], 1 }
 0x33f   :  { %612 = vsyncpa [#allocation4], 1 }
 0x340   :  { %614 = vsyncpa [#allocation4 + $0x1], 1 }

</bundles_post_ra>
